<compile_context>
chip_gen: v5e
topology: v5e:2x2
jax: 0.10.0
libtpu: 0.0.40
codegen_flags: <defaults>
</compile_context>

<pallas_src>
import math

import jax
import jax.numpy as jnp
from jax.experimental import pallas as pl
from jax.experimental.pallas import tpu as pltpu

# ---------------- config (small, consistent with an image classifier) ----------------
B = 2                                   # batch
C = 3                                   # channels
IMG = 16                                # spatial
PATCH = 8                               # patch size
N_PATCH = (IMG // PATCH) ** 2           # 4 patches per image
PATCH_DIM = C * PATCH * PATCH           # 192
HIDDEN = 32                             # base.config.hidden_size
NUM_CLASSES = 10

LANE = 128                              # lane-dense padded width
B_PAD = 8                               # sublane-dense padded batch (>= B, multiple of 8)

# ---- packed parameter slab layout (rows; all offsets are multiples of 16 for bf16 tiling)
ROW_W_EMB = 0                           # (PATCH_DIM, LANE)   patch embedding (bias-free)
ROW_W_POOL = ROW_W_EMB + PATCH_DIM      # (LANE, LANE)        pooler dense (bias-free)
ROW_W1 = ROW_W_POOL + LANE              # (LANE, LANE)        head Linear 1
ROW_W2 = ROW_W1 + LANE                  # (LANE, LANE)        head Linear 2
ROW_B = ROW_W2 + LANE                   # row ROW_B: b1, row ROW_B+1: b2
SLAB_ROWS = ((ROW_B + 2 + 15) // 16) * 16   # pad to multiple of 16 (bf16 sublane packing)

_GELU_C = math.sqrt(2.0 / math.pi)


def _gelu_tanh(x):
    # tanh-approx GELU; transcendental goes to the EUP slot, everything else VPU f32.
    return 0.5 * x * (1.0 + jnp.tanh(_GELU_C * (x + 0.044715 * x * x * x)))


# ---------------- fused Pallas kernel ----------------
def fused_classifier_kernel(x_ref, slab_ref, out_ref):
    """mean-patch embed -> tanh pooler -> Linear/GELU/Linear head, one (8,128) tile.

    x_ref:    (B_PAD, PATCH_DIM) f32, mean-pooled patch vectors (padded rows are zero).
    slab_ref: (SLAB_ROWS, LANE) bf16 packed parameters (zero padding is inert).
    out_ref:  (B_PAD, LANE) f32 lane-dense logits tile (wrapper slices the valid part).
    """
    x = x_ref[...]                                                   # (8, 192) f32

    # Static zero-cost views into the packed slab.
    w_emb = slab_ref[ROW_W_EMB:ROW_W_EMB + PATCH_DIM, :]             # (192, 128) bf16
    w_pool = slab_ref[ROW_W_POOL:ROW_W_POOL + LANE, :]               # (128, 128) bf16
    w1 = slab_ref[ROW_W1:ROW_W1 + LANE, :]                           # (128, 128) bf16
    w2 = slab_ref[ROW_W2:ROW_W2 + LANE, :]                           # (128, 128) bf16
    biases = slab_ref[ROW_B:ROW_B + 2, :].astype(jnp.float32)        # (2, 128)
    b1 = biases[0:1, :]
    b2 = biases[1:2, :]

    # ---- synthetic backbone: bias-free linear patch embedding of the mean patch ----
    emb = jnp.dot(x.astype(jnp.bfloat16), w_emb,
                  preferred_element_type=jnp.float32)                # (8, 128) f32

    # ---- pooler: dense + tanh (EUP) ----
    pooler = jnp.tanh(jnp.dot(emb.astype(jnp.bfloat16), w_pool,
                              preferred_element_type=jnp.float32))   # (8, 128) f32

    # ---- MLPHeader: Linear -> GELU -> Dropout(0.3) [identity, eval] -> Linear ----
    h = jnp.dot(pooler.astype(jnp.bfloat16), w1,
                preferred_element_type=jnp.float32) + b1
    h = _gelu_tanh(h)
    logits = jnp.dot(h.astype(jnp.bfloat16), w2,
                     preferred_element_type=jnp.float32) + b2        # (8, 128)
    out_ref[...] = logits                                            # unmasked lane-dense vst


# ---------------- wrappers ----------------
def _vmem_spec():
    return pl.BlockSpec(memory_space=pltpu.MemorySpace.VMEM)


def extract_patches(pixel_values, patch):
    # NCHW -> (B*num_patches, C*patch*patch), same ordering as a conv patch embed.
    b, c, h, w = pixel_values.shape
    x = pixel_values.reshape(b, c, h // patch, patch, w // patch, patch)
    x = x.transpose(0, 2, 4, 1, 3, 5)                                # (B, Hp, Wp, C, p, p)
    return x.reshape(b * (h // patch) * (w // patch), c * patch * patch)


@jax.jit
def image_classifier_forward(pixel_values, slab):
    patches = extract_patches(pixel_values, PATCH)                   # (B*N, PATCH_DIM)
    # Mean over patches commutes with the bias-free linear embed -> do it here (fused by XLA).
    pooled = patches.reshape(B, N_PATCH, PATCH_DIM).mean(axis=1)     # (B, PATCH_DIM)
    x = jnp.zeros((B_PAD, PATCH_DIM), jnp.float32).at[:B, :].set(pooled)

    flops = 2 * B_PAD * PATCH_DIM * LANE + 3 * (2 * B_PAD * LANE * LANE)
    transcendentals = 2 * B_PAD * LANE                               # pooler tanh + GELU tanh
    bytes_accessed = (x.size * 4) + (SLAB_ROWS * LANE * 2) + (B_PAD * LANE * 4)

    logits_padded = pl.pallas_call(
        fused_classifier_kernel,
        out_shape=jax.ShapeDtypeStruct((B_PAD, LANE), jnp.float32),
        in_specs=[_vmem_spec(), _vmem_spec()],
        out_specs=_vmem_spec(),
        cost_estimate=pl.CostEstimate(flops=flops,
                                      transcendentals=transcendentals,
                                      bytes_accessed=bytes_accessed),
    )(x, slab)
    return logits_padded[:B, :NUM_CLASSES]


def init_params(key):
    """True (small) parameter shapes, packed once into one lane-dense bf16 slab."""
    ks = jax.random.split(key, 6)
    scale = 0.02

    w_emb = scale * jax.random.normal(ks[0], (PATCH_DIM, HIDDEN), jnp.float32)
    w_pool = scale * jax.random.normal(ks[1], (HIDDEN, HIDDEN), jnp.float32)
    w1 = scale * jax.random.normal(ks[2], (HIDDEN, HIDDEN // 4), jnp.float32)
    b1 = scale * jax.random.normal(ks[3], (HIDDEN // 4,), jnp.float32)
    w2 = scale * jax.random.normal(ks[4], (HIDDEN // 4, NUM_CLASSES), jnp.float32)
    b2 = scale * jax.random.normal(ks[5], (NUM_CLASSES,), jnp.float32)

    slab = jnp.zeros((SLAB_ROWS, LANE), jnp.float32)
    slab = slab.at[ROW_W_EMB:ROW_W_EMB + PATCH_DIM, :HIDDEN].set(w_emb)
    slab = slab.at[ROW_W_POOL:ROW_W_POOL + HIDDEN, :HIDDEN].set(w_pool)
    slab = slab.at[ROW_W1:ROW_W1 + HIDDEN, :HIDDEN // 4].set(w1)
    slab = slab.at[ROW_W2:ROW_W2 + HIDDEN // 4, :NUM_CLASSES].set(w2)
    slab = slab.at[ROW_B, :HIDDEN // 4].set(b1)
    slab = slab.at[ROW_B + 1, :NUM_CLASSES].set(b2)
    # bf16 weights: half the DMA bytes, native bf16 MXU path; zero padding is inert.
    return slab.astype(jnp.bfloat16)


if __name__ == "__main__":
    key = jax.random.PRNGKey(0)
    k_x, k_p = jax.random.split(key)
    pixel_values = jax.random.normal(k_x, (B, C, IMG, IMG), jnp.float32)
    slab = init_params(k_p)

    logits = image_classifier_forward(pixel_values, slab)
    logits = jax.block_until_ready(logits)

    assert logits.shape == (B, NUM_CLASSES), logits.shape
    assert bool(jnp.all(jnp.isfinite(logits)))
    print("KERNEL_OK")
</pallas_src>

<mosaic_0001>
module attributes {stable_mosaic.version = 11 : i64} {
  func.func @fused_classifier_kernel(%arg0: memref<8x192xf32, #tpu.memory_space<vmem>>, %arg1: memref<592x128xbf16, #tpu.memory_space<vmem>>, %arg2: memref<8x128xf32, #tpu.memory_space<vmem>>) attributes {dimension_semantics = [], scalar_prefetch = 0 : i64, scratch_operands = 0 : i64, tpu.core_type = #tpu.core_type<tc>} {
    %c0 = arith.constant 0 : index
    %c0_0 = arith.constant 0 : index
    %0 = vector.load %arg0[%c0, %c0_0] : memref<8x192xf32, #tpu.memory_space<vmem>>, vector<8x192xf32>
    %c0_1 = arith.constant 0 : index
    %c0_2 = arith.constant 0 : index
    %1 = vector.load %arg1[%c0_1, %c0_2] : memref<592x128xbf16, #tpu.memory_space<vmem>>, vector<192x128xbf16>
    %c192 = arith.constant 192 : index
    %c0_3 = arith.constant 0 : index
    %2 = vector.load %arg1[%c192, %c0_3] : memref<592x128xbf16, #tpu.memory_space<vmem>>, vector<128x128xbf16>
    %c320 = arith.constant 320 : index
    %c0_4 = arith.constant 0 : index
    %3 = vector.load %arg1[%c320, %c0_4] : memref<592x128xbf16, #tpu.memory_space<vmem>>, vector<128x128xbf16>
    %c448 = arith.constant 448 : index
    %c0_5 = arith.constant 0 : index
    %4 = vector.load %arg1[%c448, %c0_5] : memref<592x128xbf16, #tpu.memory_space<vmem>>, vector<128x128xbf16>
    %c576 = arith.constant 576 : index
    %c0_6 = arith.constant 0 : index
    %5 = vector.load %arg1[%c576, %c0_6] : memref<592x128xbf16, #tpu.memory_space<vmem>>, vector<2x128xbf16>
    %6 = arith.extf %5 : vector<2x128xbf16> to vector<2x128xf32>
    %7 = vector.extract_strided_slice %6 {offsets = [0, 0], sizes = [1, 128], strides = [1, 1]} : vector<2x128xf32> to vector<1x128xf32>
    %8 = vector.extract_strided_slice %6 {offsets = [1, 0], sizes = [1, 128], strides = [1, 1]} : vector<2x128xf32> to vector<1x128xf32>
    %9 = arith.truncf %0 : vector<8x192xf32> to vector<8x192xbf16>
    %cst = arith.constant dense<0.000000e+00> : vector<8x128xf32>
    %10 = tpu.matmul %9, %1, %cst {dimension_numbers = #tpu.dot_dimension_numbers<[1], [0], [0], [1], [0, 0, 1, 1], [], []>} : vector<8x192xbf16>, vector<192x128xbf16>, vector<8x128xf32> -> vector<8x128xf32>
    %11 = arith.truncf %10 : vector<8x128xf32> to vector<8x128xbf16>
    %cst_7 = arith.constant dense<0.000000e+00> : vector<8x128xf32>
    %12 = tpu.matmul %11, %2, %cst_7 {dimension_numbers = #tpu.dot_dimension_numbers<[1], [0], [0], [1], [0, 0, 1, 1], [], []>} : vector<8x128xbf16>, vector<128x128xbf16>, vector<8x128xf32> -> vector<8x128xf32>
    %13 = math.tanh %12 : vector<8x128xf32>
    %14 = arith.truncf %13 : vector<8x128xf32> to vector<8x128xbf16>
    %cst_8 = arith.constant dense<0.000000e+00> : vector<8x128xf32>
    %15 = tpu.matmul %14, %3, %cst_8 {dimension_numbers = #tpu.dot_dimension_numbers<[1], [0], [0], [1], [0, 0, 1, 1], [], []>} : vector<8x128xbf16>, vector<128x128xbf16>, vector<8x128xf32> -> vector<8x128xf32>
    %16 = vector.broadcast %7 : vector<1x128xf32> to vector<8x128xf32>
    %17 = arith.addf %15, %16 : vector<8x128xf32>
    %cst_9 = arith.constant 5.000000e-01 : f32
    %18 = vector.broadcast %cst_9 : f32 to vector<8x128xf32>
    %19 = arith.mulf %18, %17 : vector<8x128xf32>
    %cst_10 = arith.constant 4.471500e-02 : f32
    %20 = vector.broadcast %cst_10 : f32 to vector<8x128xf32>
    %21 = arith.mulf %20, %17 : vector<8x128xf32>
    %22 = arith.mulf %21, %17 : vector<8x128xf32>
    %23 = arith.mulf %22, %17 : vector<8x128xf32>
    %24 = arith.addf %17, %23 : vector<8x128xf32>
    %cst_11 = arith.constant 0.797884583 : f32
    %25 = vector.broadcast %cst_11 : f32 to vector<8x128xf32>
    %26 = arith.mulf %25, %24 : vector<8x128xf32>
    %27 = math.tanh %26 : vector<8x128xf32>
    %cst_12 = arith.constant 1.000000e+00 : f32
    %28 = vector.broadcast %cst_12 : f32 to vector<8x128xf32>
    %29 = arith.addf %28, %27 : vector<8x128xf32>
    %30 = arith.mulf %19, %29 : vector<8x128xf32>
    %31 = arith.truncf %30 : vector<8x128xf32> to vector<8x128xbf16>
    %cst_13 = arith.constant dense<0.000000e+00> : vector<8x128xf32>
    %32 = tpu.matmul %31, %4, %cst_13 {dimension_numbers = #tpu.dot_dimension_numbers<[1], [0], [0], [1], [0, 0, 1, 1], [], []>} : vector<8x128xbf16>, vector<128x128xbf16>, vector<8x128xf32> -> vector<8x128xf32>
    %33 = vector.broadcast %8 : vector<1x128xf32> to vector<8x128xf32>
    %34 = arith.addf %32, %33 : vector<8x128xf32>
    %c0_14 = arith.constant 0 : index
    %c0_15 = arith.constant 0 : index
    %35 = vector.load %arg2[%c0_14, %c0_15] : memref<8x128xf32, #tpu.memory_space<vmem>>, vector<8x128xf32>
    tpu.vector_store %arg2[%c0_14, %c0_15], %34 {strides = array<i32>} : memref<8x128xf32, #tpu.memory_space<vmem>>, vector<8x128xf32>,
    return
  }
}

</mosaic_0001>

<bundles_post_ra>
// kernel: image_classifier_forward.1
= control target key start
LH: loop header
LB: loop body
LE: loop exit
PB: predicated region body
PF: predicated region fallthrough
CT: control target
= control target key end

     0   :  { %vm162_vm0 = vcmask 523264   ;;  %s715_s1 = inlined_call_operand.vmem [shape: bf16[592,128], index: 1, kind: input, shape index: {}]   ;;  %s716_s0 = inlined_call_operand.vmem [shape: f32[8,192], index: 0, kind: input, shape index: {}]   ;;  %s717_s2 = inlined_call_operand.vmem [shape: f32[8,128], index: 2, kind: output, shape index: {}]  }
   0x1   :  { %v547_v0 = vld [vmem:[%s715_s1 + $0x38] sm:$0xff]  ;;  %v546_v2 = vld [vmem:[%s715_s1 + $0x30] sm:$0xff]  ;;  %v545_v5 = vld [vmem:[%s715_s1 + $0x28] sm:$0xff] }
   0x2   :  { %v551_v1 = vld [vmem:[%s715_s1 + $0x58] sm:$0xff]  ;;  %166 = vmatpush.bf16.msra.mxu0 %v547_v0  ;;  %v550_v3 = vld [vmem:[%s715_s1 + $0x50] sm:$0xff]  ;;  %v549_v7 = vld [vmem:[%s715_s1 + $0x48] sm:$0xff] }
   0x3   :  { %183 = vmatpush.bf16.msra.mxu1 %v551_v1  ;;  %v559_v4 = vld [vmem:[%s715_s1 + $0x98] sm:$0xff]  ;;  %v558_v6 = vld [vmem:[%s715_s1 + $0x90] sm:$0xff]  ;;  %v544_v8 = vld [vmem:[%s715_s1 + $0x20] sm:$0xff] }
   0x4   :  { %241 = vmatpush.bf16.msra.mxu2 %v559_v4  ;;  %v557_v9 = vld [vmem:[%s715_s1 + $0x88] sm:$0xff]  ;;  %v548_v10 = vld [vmem:[%s715_s1 + $0x40] sm:$0xff]  ;;  %v543_v12 = vld [vmem:[%s715_s1 + $0x18] sm:$0xff] }
   0x5   :  { %v13_v11 = vld [vmem:[%s716_s0 + $0x8] sm:$0xff]  ;;  %v556_v14 = vld [vmem:[%s715_s1 + $0x80] sm:$0xff]  ;;  %v542_v15 = vld [vmem:[%s715_s1 + $0x10] sm:$0xff] }
   0x6   :  { %167 = vmatpush.bf16.msra.mxu0 %v546_v2  ;;  %v89_v13 = vpack.c.bf16 %v13_v11, %v13_v11  ;;  %v555_v16 = vld [vmem:[%s715_s1 + $0x78] sm:$0xff]  ;;  %v541_v17 = vld [vmem:[%s715_s1 + $0x8] sm:$0xff]  ;;  %v540_v18 = vld [vmem:[%s715_s1] sm:$0xff] }
   0x7   :  { %184 = vmatpush.bf16.msra.mxu1 %v550_v3  ;;  %v12_v19 = vld [vmem:[%s716_s0] sm:$0xff]  ;;  %v554_v21 = vld [vmem:[%s715_s1 + $0x70] sm:$0xff]  ;;  %v553_v22 = vld [vmem:[%s715_s1 + $0x68] sm:$0xff] }
   0x8   :  { %242 = vmatpush.bf16.msra.mxu2 %v558_v6  ;;  %v88_v20 = vpack.c.bf16 %v12_v19, %v12_v19  ;;  %v552_v23 = vld [vmem:[%s715_s1 + $0x60] sm:$0xff]  ;;  %v567_v24 = vld [vmem:[%s715_s1 + $0xd8] sm:$0xff]  ;;  %v566_v25 = vld [vmem:[%s715_s1 + $0xd0] sm:$0xff] }
   0x9   :  { %305 = vmatpush.bf16.msra.mxu3 %v567_v24  ;;  %v565_v26 = vld [vmem:[%s715_s1 + $0xc8] sm:$0xff]  ;;  %v564_v28 = vld [vmem:[%s715_s1 + $0xc0] sm:$0xff]  ;;  %v563_v29 = vld [vmem:[%s715_s1 + $0xb8] sm:$0xff] }
   0xa   :  { %168 = vmatpush.bf16.msra.mxu0 %v545_v5  ;;  %v562_v31 = vld [vmem:[%s715_s1 + $0xb0] sm:$0xff]  ;;  %v561_v36 = vld [vmem:[%s715_s1 + $0xa8] sm:$0xff]  ;;  %v560_v37 = vld [vmem:[%s715_s1 + $0xa0] sm:$0xff] }
   0xb   :  { %185 = vmatpush.bf16.msra.mxu1 %v549_v7  ;;  %v575_v38 = vld [vmem:[%s715_s1 + $0x118] sm:$0xff]  ;;  %v574_v39 = vld [vmem:[%s715_s1 + $0x110] sm:$0xff]  ;;  %v573_v44 = vld [vmem:[%s715_s1 + $0x108] sm:$0xff] }
   0xc   :  { %243 = vmatpush.bf16.msra.mxu2 %v557_v9  ;;  %v572_v45 = vld [vmem:[%s715_s1 + $0x100] sm:$0xff]  ;;  %v571_v46 = vld [vmem:[%s715_s1 + $0xf8] sm:$0xff]  ;;  %v570_v47 = vld [vmem:[%s715_s1 + $0xf0] sm:$0xff] }
   0xd   :  { %306 = vmatpush.bf16.msra.mxu3 %v566_v25  ;;  %v569_v48 = vld [vmem:[%s715_s1 + $0xe8] sm:$0xff]  ;;  %v568_v49 = vld [vmem:[%s715_s1 + $0xe0] sm:$0xff] }
   0xe   :  { %169 = vmatpush.bf16.msra.mxu0 %v544_v8  ;;  %v86_v50 = vld [vmem:[%s715_s1 + $0x120] sm:$0x1] }
   0xf   :  { %186 = vmatpush.bf16.msra.mxu1 %v548_v10  ;;  %v87_v51 = vunpack.c.l.bf16 %v86_v50 }
  0x10   :  { %244 = vmatpush.bf16.msra.mxu2 %v556_v14 }
  0x11   :  { %307 = vmatpush.bf16.msra.mxu3 %v565_v26  ;;  %v256_v52 = vperm.slane %v87_v51, 0  ;;  %v328_v2 = vperm.slane %v87_v51, 1 }
  0x12   :  { %170 = vmatpush.bf16.msra.mxu0 %v543_v12  ;;  %443 = vmatmul.msk.bf16.vlgmr.msra.gmra.mxu1 %vm162_vm0, %v89_v13 }
  0x13   :  { %377 = vmatpush.bf16.msrb.mxu1 %v575_v38 }
  0x14   :  { %245 = vmatpush.bf16.msra.mxu2 %v555_v16 }
  0x15   :  { %308 = vmatpush.bf16.msra.mxu3 %v564_v28 }
  0x16   :  { %171 = vmatpush.bf16.msra.mxu0 %v542_v15 }
  0x17   :  { %378 = vmatpush.bf16.msrb.mxu1 %v574_v39 }
  0x18   :  { %246 = vmatpush.bf16.msra.mxu2 %v554_v21 }
  0x19   :  { %309 = vmatpush.bf16.msra.mxu3 %v563_v29 }
  0x1a   :  { %172 = vmatpush.bf16.msra.mxu0 %v541_v17 }
  0x1b   :  { %379 = vmatpush.bf16.msrb.mxu1 %v573_v44 }
  0x1c   :  { %247 = vmatpush.bf16.msra.mxu2 %v553_v22 }
  0x1d   :  { %310 = vmatpush.bf16.msra.mxu3 %v562_v31 }
  0x1e   :  { %173 = vmatpush.bf16.msra.mxu0 %v540_v18 }
  0x1f   :  { %380 = vmatpush.bf16.msrb.mxu1 %v572_v45 }
  0x20   :  { %248 = vmatpush.bf16.msra.mxu2 %v552_v23 }
  0x21   :  { %174 = vmatmul.bf16.vlgmr.msra.gmra.mxu0 %v88_v20  ;;  %311 = vmatpush.bf16.msra.mxu3 %v561_v36 }
  0x23   :  { %381 = vmatpush.bf16.msrb.mxu1 %v571_v46 }
  0x25   :  { %312 = vmatpush.bf16.msra.mxu3 %v560_v37 }
  0x27   :  { %382 = vmatpush.bf16.msrb.mxu1 %v570_v47 }
  0x2b   :  { %383 = vmatpush.bf16.msrb.mxu1 %v569_v48 }
  0x2f   :  { %384 = vmatpush.bf16.msrb.mxu1 %v568_v49 }
  0x8f   :  { %v188_v27 = vpop.f32.mrf.mxu1 }
  0x97   :  { %v190_v30 = vpop.f32.mrf.mxu1 }
  0x9e   :  { %v175_v32 = vpop.f32.mrf.mxu0 }
  0x9f   :  { %v189_v33 = vadd.f32 %v188_v27, %v175_v32 }
  0xa1   :  { %v192_v34 = vpack.c.bf16 %v189_v33, %v189_v33 }
  0xa3   :  { %249 = vmatmul.bf16.vlgmr.msra.gmra.mxu2 %v192_v34 }
  0xa6   :  { %v177_v35 = vpop.f32.mrf.mxu0 }
 0x126   :  { %v250_v40 = vpop.f32.mrf.mxu2 }
 0x127   :  { %576 = vtanh.f32 %v250_v40 }
 0x12d   :  { %v577_v41 = vpop.eup %576 }
 0x12e   :  { %v252_v42 = vpop.f32.mrf.mxu2  ;;  %v255_v43 = vpack.c.bf16 %v577_v41, %v577_v41 }
 0x130   :  { %313 = vmatmul.bf16.vlgmr.msra.gmra.mxu3 %v255_v43 }
 0x1b3   :  { %v314_v53 = vpop.f32.mrf.mxu3 }
 0x1b4   :  { %v315_v54 = vadd.f32 %v314_v53, %v256_v52 }
 0x1b6   :  { %v319_v55 = vmul.f32 0.044715, %v315_v54  ;;  %v318_v62 = vmul.f32 0.5, %v315_v54 }
 0x1b8   :  { %v320_v56 = vmul.f32 %v319_v55, %v315_v54 }
 0x1ba   :  { %v321_v57 = vmul.f32 %v320_v56, %v315_v54 }
 0x1bb   :  { %v316_v58 = vpop.f32.mrf.mxu3 }
 0x1bc   :  { %v322_v59 = vadd.f32 %v321_v57, %v315_v54 }
 0x1be   :  { %v323_v60 = vmul.f32 0.7978846, %v322_v59 }
 0x1c0   :  { %578 = vtanh.f32 %v323_v60 }
 0x1c6   :  { %v579_v61 = vpop.eup %578 }
 0x1c7   :  { %v325_v63 = vadd.f32 1.0, %v579_v61 }
 0x1c9   :  { %v326_v0 = vmul.f32 %v325_v63, %v318_v62 }
 0x1cb   :  { %v327_v1 = vpack.c.bf16 %v326_v0, %v326_v0 }
 0x1cd   :  { %385 = vmatmul.bf16.vlgmr.msrb.gmra.mxu1 %v327_v1 }
 0x24a   :  { %v386_v3 = vpop.f32.mrf.mxu1 }
 0x24b   :  { %v387_v4 = vadd.f32 %v386_v3, %v328_v2 }
 0x24d   :  { %390 = vst [vmem:[%s717_s2] sm:$0xff] %v387_v4 }
 0x252   :  { %v388_v5 = vpop.f32.mrf.mxu1 }

</bundles_post_ra>
